<compile_context>
chip_gen: v5e
topology: v5e:2x2
jax: 0.10.0
libtpu: 0.0.40
codegen_flags: <defaults>
</compile_context>

<pallas_src>
import jax
import jax.numpy as jnp
from jax.experimental import pallas as pl
from jax.experimental.pallas import tpu as pltpu

_LANES = 128
# 4096 rows * 128 lanes * 4 B = 2 MiB per f32 tile buffer.
# Double-buffered input + output = 4 * 2 MiB = 8 MiB < 16 MiB (v5e default scoped VMEM).
_MAX_BLOCK_ROWS = 4096


def _copy_kernel(x_ref, o_ref):
    o_ref[...] = x_ref[...]


def _choose_block_rows(rows: int) -> int:
    """Pick block_rows for a (rows, 128) lane-dense copy.

    - Caps per-buffer tile size (VMEM-safe on v5e/v6e/v7x).
    - Prefers >= 2 blocks when rows >= 16 so the "parallel" grid axis can shard
      across v7x's two TensorCores (harmless ~0.35 us extra step on 1-TC chips).
    - block_rows is either a multiple of 8 (ragged last block is fine) or equals
      the full row extent (always layout-legal).
    """
    if rows > _MAX_BLOCK_ROWS:
        return _MAX_BLOCK_ROWS
    if rows >= 16:
        half = -(-rows // 2)               # cdiv(rows, 2)
        half = ((half + 7) // 8) * 8       # sublane-align (multiple of 8)
        if half < rows:
            return half
    return rows                            # single full-extent block


def split_cat(x):
    """torch.cat(torch.split(x, [1,1,1], dim=1), dim=1) == identity copy of x."""
    N, C, H, W = x.shape
    assert C == 3, "module splits dim=1 into [1, 1, 1]"
    total = N * C * H * W
    itemsize = jnp.dtype(x.dtype).itemsize

    # Lane-dense flattened view; pad up to a multiple of 128 lanes if needed so we
    # never emit masked sub-128-lane stores or a whole-array 4D block.
    pad = (-total) % _LANES
    flat = x.reshape(total)
    if pad:
        flat = jnp.pad(flat, (0, pad))
    rows = (total + pad) // _LANES
    x2 = flat.reshape(rows, _LANES)

    block_rows = _choose_block_rows(rows)
    grid_n = pl.cdiv(rows, block_rows)

    out2 = pl.pallas_call(
        _copy_kernel,
        out_shape=jax.ShapeDtypeStruct((rows, _LANES), x.dtype),
        grid_spec=pltpu.PrefetchScalarGridSpec(
            num_scalar_prefetch=0,
            grid=(grid_n,),
            in_specs=[pl.BlockSpec((block_rows, _LANES), lambda i: (i, 0))],
            out_specs=pl.BlockSpec((block_rows, _LANES), lambda i: (i, 0)),
        ),
        compiler_params=pltpu.CompilerParams(
            dimension_semantics=("parallel",),
        ),
        cost_estimate=pl.CostEstimate(
            flops=0,
            transcendentals=0,
            bytes_accessed=2 * rows * _LANES * itemsize,
        ),
    )(x2)

    out_flat = out2.reshape(rows * _LANES)
    if pad:
        out_flat = out_flat[:total]
    return out_flat.reshape(N, C, H, W)


def model_forward(x1):
    # Mirrors Model.forward: returns a 1-tuple.
    # (self.features Conv2d/ReLU is defined but unused in forward -> not computed.)
    return (split_cat(x1),)


if __name__ == "__main__":
    key = jax.random.PRNGKey(0)
    # Shape matching the original spec's input (small): (1, 3, 64, 64).
    x1 = jax.random.normal(key, (1, 3, 64, 64), dtype=jnp.float32)

    # Pure-JAX reference of split([1,1,1], dim=1) + cat(dim=1).
    ref = jnp.concatenate([x1[:, 0:1], x1[:, 1:2], x1[:, 2:3]], axis=1)
    ref = jax.block_until_ready(ref)

    (out,) = model_forward(x1)
    out = jax.block_until_ready(out)

    assert out.shape == x1.shape
    assert out.dtype == x1.dtype
    assert jnp.allclose(out, ref), "mismatch vs reference"

    print("KERNEL_OK")
</pallas_src>

<mosaic_0001>
module attributes {stable_mosaic.version = 11 : i64} {
  func.func @_copy_kernel(%arg0: i32, %arg1: memref<48x128xf32, #tpu.memory_space<vmem>>, %arg2: memref<48x128xf32, #tpu.memory_space<vmem>>) attributes {dimension_semantics = [#tpu.dimension_semantics<parallel>], iteration_bounds = array<i64: 2>, scalar_prefetch = 0 : i64, scratch_operands = 0 : i64, tpu.core_type = #tpu.core_type<tc>, window_params = [{transform_indices = @transform_0, window_bounds = array<i64: 48, 128>}, {transform_indices = @transform_1, window_bounds = array<i64: 48, 128>}]} {
    %c0 = arith.constant 0 : index
    %c0_0 = arith.constant 0 : index
    %0 = vector.load %arg1[%c0, %c0_0] : memref<48x128xf32, #tpu.memory_space<vmem>>, vector<48x128xf32>
    %c0_1 = arith.constant 0 : index
    %c0_2 = arith.constant 0 : index
    %1 = vector.load %arg2[%c0_1, %c0_2] : memref<48x128xf32, #tpu.memory_space<vmem>>, vector<48x128xf32>
    tpu.vector_store %arg2[%c0_1, %c0_2], %0 {strides = array<i32>} : memref<48x128xf32, #tpu.memory_space<vmem>>, vector<48x128xf32>,
    return
  }
  func.func @transform_0(%arg0: i32) -> (i32, i32) {
    %c0_i32 = arith.constant 0 : i32
    %c0_i32_0 = arith.constant 0 : i32
    return %arg0, %c0_i32 : i32, i32
  }
  func.func @transform_1(%arg0: i32) -> (i32, i32) {
    %c0_i32 = arith.constant 0 : i32
    %c0_i32_0 = arith.constant 0 : i32
    return %arg0, %c0_i32 : i32, i32
  }
}

</mosaic_0001>

<bundles_post_ra>
// kernel: tpu_custom_call.1
= control target key start
LH: loop header
LB: loop body
LE: loop exit
PB: predicated region body
PF: predicated region fallthrough
CT: control target
= control target key end

     0   :  { %6 = vsyncpa [#allocation3], 0  ;;  %s531_s0 = inlined_call_operand.hbm [shape: f32[96,128], index: 0, kind: input, shape index: {}]   ;;  %s532_s1 = inlined_call_operand.hbm [shape: f32[96,128], index: 1, kind: output, shape index: {}]  }
   0x1   :  { %8 = vsyncpa [#allocation3 + $0x1], 0 }
   0x2   :  { %9 = vsyncpa [#allocation4], 0 }
   0x3   :  { %11 = vsyncpa [#allocation4 + $0x1], 0  ;;  %s414_s6 = smov 0   ;;  %s416_s7 = smov 0  }
   0x4   :  { %s418_s8 = smov 0   ;;  %s420_s9 = smov 0  }
   0x5 LB: > { %s435_s10 = sadd.s32 4294967295, %s398_s9   ;;  %s240_s11 = sadd.s32 4294967294, %s398_s9   ;;  %s398_s9 = sphi %s420_s9, %s540_s9   ;;  %s394_s8 = sphi %s418_s8, %s539_s8   ;;  %s390_s7 = sphi %s416_s7, %s538_s7   ;;  %s386_s6 = sphi %s414_s6, %s537_s6  }
   0x6   : > { %s439_s12 = sadd.s32 1, %s398_s9   ;;  %s24_s13 = sadd.s32 1, %s394_s8 }
   0x7   : > { %s21_s14 = ssub.s32 %s398_s9, %s439_s12  ;;  %p31_p0 = scmp.ne.s32.totalorder %s394_s8, %s390_s7 }
   0x8   : > { %p22_p1 = scmp.eq.s32.totalorder %s21_s14, 0  ;;  %p32_p2 = scmp.eq.s32.totalorder %s398_s9, 0 }
   0x9   : > { %p37_p3 = scmp.ne.s32.totalorder %s390_s7, %s386_s6  ;;  %p38_p4 = scmp.eq.s32.totalorder %s435_s10, 0 }
   0xa   : > { %s451_s15 = scalar_select %p22_p1, %s394_s8, %s24_s13  }
   0xb   : > { %p33_p5 = por %p32_p2, %p31_p0  ;;  %p453_p6 = por %p38_p4, %p37_p3 }
   0xc   : > { %p61_p7 = scmp.eq.s32.totalorder %s435_s10, 1  ;;  %p67_p8 = scmp.eq.s32.totalorder %s240_s11, 1 }
   0xd   : > { %p242_p9 = scmp.ge.s32.totalorder %s398_s9, 2  ;;  %p264_p10 = scmp.lt.s32.totalorder %s398_s9, 2 }
   0xe   : > { %p460_p11 = por %p61_p7, %p31_p0  ;;  %p464_p12 = por %p67_p8, %p37_p3 }
   0xf   : > { %s87_s19 = sand.u32 1, %s394_s8   ;;  %s248_s20 = smul.u32 48, %s398_s9 }
  0x10   : > { %s250_s21 = smul.u32 48, %s87_s19  ;;  %p473_p13 = pnand %p264_p10, %p33_p5 }
  0x11   : > { %s96_s24 = scalar_lea.hbm %s531_s0, %s248_s20  ;;  %s88_s29 = scalar_lea.sflag [#allocation3], %s87_s19 }
  0x12   : > { %s97_s26 = sshll.u32 %s96_s24, 4  ;;  %s91_s27 = scalar_lea.vmem [#allocation2], %s250_s21  ;;  %s98_s26 = int_to_ptr.hbm [resolvable:$true] %s97_s26 }
  0x13   : > { %s99_s28 = sshll.u32 %s91_s27, 4  ;;  %s302_s30 = sshra.s32 %s98_s26, 4  ;;  %s100_s28 = int_to_ptr.vmem [resolvable:$true] %s99_s28  ;;  %s303_s30 = int_to_ptr.hbm [resolvable:$true] %s302_s30 }
  0x14   : > { %s304_s2 = scalar_lea.hbm %s303_s30, 48  ;;  %p306_p1 = pneg %p473_p13 }
  0x15   : > { %p305_p0 = scmp.ne.s32.totalorder %s303_s30, %s304_s2  ;;  %s309_s5 = scalar_lea.hbm %s531_s0, 96 }
  0x16   : > { %p310_p4 = scmp.lt.s32.totalorder %s303_s30, %s531_s0  ;;  %p311_p5 = scmp.lt.s32.totalorder %s309_s5, %s304_s2 }
  0x17   : > { %p307_p2 = pnand %p306_p1, %p305_p0 }
  0x18   : > { %p312_p7 = por %p311_p5, %p310_p4 }
  0x19   : > { %p308_p3 = pneg %p307_p2 }
  0x1b   : > { %p313_p8 = pnand %p312_p7, %p308_p3 }
  0x1d   : > { %316 = shalt.err (!%p313_p8)
}
  0x1e   : > { %s400_s14 = smov 128   ;;  %s401_s19 = smov 8  }
  0x1f   : > { %259 = dma.hbm_to_vmem [thread:$0]  (!%p473_p13), %s98_s26, 768, %s100_s28, %s88_s29, %s400_s14, %s400_s14, %s401_s19  }
  0x20   : > { %p244_p10 = scmp.ge.s32.totalorder %s398_s9, 1  ;;  %p107_p0 = scmp.lt.s32.totalorder %s398_s9, 3 }
  0x22   : > { %p108_p1 = pnand %p244_p10, %p107_p0 }
  0x23   : > { %s490_s20 = sand.u32 (!%p108_p1), 1, %s390_s7  }
  0x24   : > { %111 = sbr.rel (%p108_p1) target bundleno = 59 (0x3b), region = 24  ;;  %s114_s22 = scalar_lea.sflag (!%p108_p1), [#allocation3], %s490_s20 }
  0x25   : > { %s251_s21 = smul.u32 (!%p108_p1), 48, %s490_s20 }
  0x27   : > { %s117_s23 = scalar_lea.vmem (!%p108_p1), [#allocation2], %s251_s21 }
  0x29   : > { %377 = dma.done.wait (%p453_p6), %s114_s22, 768  }
  0x2a   : > { %379 = vsyncadd (%p453_p6), %s114_s22, 4294966528  ;;  %s249_s24 = smul.u32 48, %s435_s10  ;;  %v139_v0 = vld [vmem:[%s117_s23] sm:$0xff]  ;;  %s136_s28 = scalar_lea.vmem [#allocation5], %s251_s21  ;;  %v140_v1 = vld [vmem:[%s117_s23 + $0x8] sm:$0xff] }
  0x2b   : > { %s164_s29 = sshll.u32 %s136_s28, 4  ;;  %v141_v2 = vld [vmem:[%s117_s23 + $0x10] sm:$0xff]  ;;  %145 = vst [vmem:[%s136_s28] sm:$0xff] %v139_v0  ;;  %v142_v3 = vld [vmem:[%s117_s23 + $0x18] sm:$0xff]  ;;  %v143_v4 = vld [vmem:[%s117_s23 + $0x20] sm:$0xff]  ;;  %s152_s10 = scalar_lea.sflag [#allocation4], %s490_s20  ;;  %s165_s29 = int_to_ptr.vmem [resolvable:$true] %s164_s29 }
  0x2c   : > { %s163_s27 = scalar_lea.hbm %s532_s1, %s249_s24  ;;  %146 = vst [vmem:[%s136_s28 + $0x8] sm:$0xff] %v140_v1  ;;  %v144_v5 = vld [vmem:[%s117_s23 + $0x28] sm:$0xff]  ;;  %s352_s5 = scalar_lea.hbm %s532_s1, 96 }
  0x2d   : > { %s166_s30 = sshll.u32 %s163_s27, 4  ;;  %147 = vst [vmem:[%s136_s28 + $0x10] sm:$0xff] %v141_v2  ;;  %s167_s30 = int_to_ptr.hbm [resolvable:$true] %s166_s30 }
  0x2e   : > { %148 = vst [vmem:[%s136_s28 + $0x18] sm:$0xff] %v142_v3  ;;  %s346_s16 = sshra.s32 %s167_s30, 4  ;;  %s347_s16 = int_to_ptr.hbm [resolvable:$true] %s346_s16 }
  0x2f   : > { %149 = vst [vmem:[%s136_s28 + $0x20] sm:$0xff] %v143_v4  ;;  %s348_s2 = scalar_lea.hbm %s347_s16, 48  ;;  %p353_p3 = scmp.lt.s32.totalorder %s347_s16, %s532_s1 }
  0x30   : > { %150 = vst [vmem:[%s136_s28 + $0x28] sm:$0xff] %v144_v5  ;;  %p349_p6 = scmp.ne.s32.totalorder %s347_s16, %s348_s2  ;;  %p354_p4 = scmp.lt.s32.totalorder %s352_s5, %s348_s2 }
  0x32   : > { %p350_p13 = pnand %p349_p6, %p460_p11  ;;  %p355_p5 = por %p354_p4, %p353_p3 }
  0x34   : > { %p351_p2 = pneg %p350_p13 }
  0x36   : > { %p356_p7 = pnand %p355_p5, %p351_p2 }
  0x38   : > { %359 = shalt.err (!%p356_p7)
}
  0x39   : > { %s402_s14 = smov 128   ;;  %s403_s19 = smov 8  }
  0x3a   : > { %254 = dma.vmem_to_hbm [thread:$0]  (%p460_p11), %s165_s29, 768, %s167_s30, %s152_s10, %s402_s14, %s402_s14, %s403_s19  }
  0x3b PF: > { %s181_s20 = sand.u32 1, %s386_s6   ;;  %p261_p8 = pnand %p242_p9, %p464_p12 }
  0x3c   : > { %s182_s21 = scalar_lea.sflag [#allocation4], %s181_s20 }
  0x3d   : > { %p262_p10 = pneg %p261_p8 }
  0x3f   : > { %381 = dma.done.wait (%p262_p10), %s182_s21, 768  }
  0x40   : > { %383 = vsyncadd (%p262_p10), %s182_s21, 4294966528  ;;  %p14_p0 = scmp.ge.s32.totalorder %s439_s12, 4   ;;  %s537_s6 = smov %s390_s7 }
  0x41   : > { %s538_s7 = smov %s394_s8  ;;  %s539_s8 = smov %s451_s15 }
  0x42   : > { %s540_s9 = smov %s439_s12  ;;  %16 = sbr.rel (!%p14_p0) target bundleno = 5 (0x5), region = 69 }
  0x47   :  { %188 = vsyncpa [#allocation3], 1 }
  0x48   :  { %190 = vsyncpa [#allocation3 + $0x1], 1 }
  0x49   :  { %191 = vsyncpa [#allocation4], 1 }
  0x4a   :  { %193 = vsyncpa [#allocation4 + $0x1], 1 }

</bundles_post_ra>
